<compile_context>
chip_gen: v5e
topology: v5e:2x2
jax: 0.10.0
libtpu: 0.0.40
codegen_flags: <defaults>
</compile_context>

<pallas_src>
import jax
import jax.numpy as jnp
from jax import lax
from jax.experimental import pallas as pl
from jax.experimental.pallas import tpu as pltpu

_MIB = 1024 * 1024


def _make_pixelnorm_kernel(num_channels: int):
    inv_c = 1.0 / float(num_channels)

    def kernel(x_ref, o_ref):
        # x_ref block: (Bt, C, T) — batch tile, full channels, spatial tile.
        x = x_ref[...]
        xf = x.astype(jnp.float32)
        ss = jnp.sum(xf * xf, axis=1, keepdims=True)       # (Bt, 1, T), f32
        scale = lax.rsqrt(ss * inv_c + 1e-8)                # EUP, small tensor
        # Multiply in f32, single cast at the store (HBM-bound kernel: the
        # extra f32 VALU work is free; strictly better numerics for bf16).
        o_ref[...] = (xf * scale).astype(o_ref.dtype)

    return kernel


def _vmem_capacity_bytes() -> int:
    try:
        return int(pltpu.get_tpu_info().vmem_capacity_bytes)
    except Exception:
        return 64 * _MIB  # conservative default (v7x per-TC VMEM)


def _round_up(x: int, m: int) -> int:
    return ((x + m - 1) // m) * m


def _plan(B: int, C: int, HW: int, itemsize: int):
    """Pick (batch_tile, spatial_tile, vmem_limit_bytes) for the given shape."""
    vmem_cap = _vmem_capacity_bytes()
    # Generation-aware block target.
    if vmem_cap <= 64 * _MIB:          # v7x-class: fast HBM, small per-TC VMEM
        target_block_bytes = 8 * _MIB
    else:                              # v5e / v6e: 128 MiB VMEM
        target_block_bytes = 4 * _MIB
    vmem_budget = int(0.75 * vmem_cap)

    sublane = max(8, 32 // itemsize)   # 8 (f32), 16 (bf16), 32 (int8)
    pad_c = _round_up(C, sublane)

    def block_vmem(bt: int, t: int) -> int:
        pad_t = _round_up(t, 128)
        blk = bt * pad_c * pad_t * itemsize
        # 2 arrays (in + out) x double buffering + f32 intermediates headroom.
        return 4 * blk + 2 * bt * pad_c * pad_t * 4

    if HW >= 128:
        bt = 1
        row_bytes = pad_c * itemsize
        t = (target_block_bytes // max(1, row_bytes)) // 128 * 128
        t = max(512, t)                        # >=512-lane rows: fewer, longer DMA bursts
        t_cap = (HW // 128) * 128              # largest multiple of 128 <= HW
        t = min(t, t_cap)
        # Very-large-C corner (incl. v5e's default scoped limit): shrink until
        # the double-buffered footprint fits the VMEM budget.
        while t > 128 and block_vmem(bt, t) > vmem_budget:
            t = max(128, ((t // 2) // 128) * 128)
        # Guarantee >= 2 grid programs so both v7x TensorCores get work.
        if B == 1 and t >= HW and HW >= 256:
            t = max(128, ((HW // 2) // 128) * 128)
    else:
        # Low-resolution levels: last dim < 128 -> fuse batch into one block.
        t = HW
        per_b = pad_c * _round_up(HW, 128) * itemsize
        bt = max(1, target_block_bytes // max(1, per_b))
        bt = min(bt, B)
        while bt > 1 and block_vmem(bt, t) > vmem_budget:
            bt = max(1, bt // 2)
        if B > 1 and bt >= B:
            bt = pl.cdiv(B, 2)                 # keep >= 2 programs for 2 TCs

    vmem_limit = max(32 * _MIB, block_vmem(bt, t) + 4 * _MIB)
    vmem_limit = min(vmem_limit, int(0.9 * vmem_cap))
    return bt, t, int(vmem_limit)


@jax.jit
def pixel_norm(x: jax.Array) -> jax.Array:
    """x: (B, C, H, W) NCHW tensor. Returns x / sqrt(mean(x**2, dim=1) + 1e-8)."""
    B, C, H, W = x.shape
    HW = H * W
    x2 = x.reshape(B, C, HW)  # free reshape: H*W contiguous in NCHW

    itemsize = x.dtype.itemsize
    bt, t, vmem_limit = _plan(B, C, HW, itemsize)
    kernel = _make_pixelnorm_kernel(C)

    if HW >= 128:
        grid = (B, pl.cdiv(HW, t))
        in_spec = pl.BlockSpec((1, C, t), lambda b, s: (b, 0, s))
        out_spec = pl.BlockSpec((1, C, t), lambda b, s: (b, 0, s))
        semantics = ("parallel", "parallel")
    else:
        grid = (pl.cdiv(B, bt),)
        in_spec = pl.BlockSpec((bt, C, HW), lambda b: (b, 0, 0))
        out_spec = pl.BlockSpec((bt, C, HW), lambda b: (b, 0, 0))
        semantics = ("parallel",)

    out2 = pl.pallas_call(
        kernel,
        out_shape=jax.ShapeDtypeStruct((B, C, HW), x.dtype),
        grid=grid,
        in_specs=[in_spec],
        out_specs=out_spec,
        compiler_params=pltpu.CompilerParams(
            dimension_semantics=semantics,
            vmem_limit_bytes=vmem_limit,
        ),
    )(x2)

    return out2.reshape(B, C, H, W)


if __name__ == "__main__":
    key = jax.random.PRNGKey(0)

    def _ref(x):
        return x / jnp.sqrt(jnp.mean(x * x, axis=1, keepdims=True) + 1e-8)

    # Main case: HW >= 128 path (lane-dense spatial tiling).
    B, C, H, W = 2, 4, 16, 16
    x = jax.random.normal(key, (B, C, H, W), dtype=jnp.float32)
    out = pixel_norm(x)
    jax.block_until_ready(out)
    assert out.shape == x.shape and out.dtype == x.dtype
    assert jnp.allclose(out, _ref(x), atol=1e-5, rtol=1e-5)

    # Low-resolution case: HW < 128 path (batch-fused blocks).
    x_small = jax.random.normal(jax.random.PRNGKey(1), (2, 4, 8, 8), dtype=jnp.float32)
    out_small = pixel_norm(x_small)
    jax.block_until_ready(out_small)
    assert jnp.allclose(out_small, _ref(x_small), atol=1e-5, rtol=1e-5)

    print("KERNEL_OK")
</pallas_src>

<mosaic_0001>
module attributes {stable_mosaic.version = 11 : i64} {
  func.func @kernel(%arg0: i32, %arg1: i32, %arg2: memref<1x4x256xf32, #tpu.memory_space<vmem>>, %arg3: memref<1x4x256xf32, #tpu.memory_space<vmem>>) attributes {dimension_semantics = [#tpu.dimension_semantics<parallel>, #tpu.dimension_semantics<parallel>], iteration_bounds = array<i64: 2, 1>, scalar_prefetch = 0 : i64, scratch_operands = 0 : i64, tpu.core_type = #tpu.core_type<tc>, window_params = [{transform_indices = @transform_0, window_bounds = array<i64: 1, 4, 256>}, {transform_indices = @transform_1, window_bounds = array<i64: 1, 4, 256>}]} {
    %c0 = arith.constant 0 : index
    %c0_0 = arith.constant 0 : index
    %c0_1 = arith.constant 0 : index
    %0 = vector.load %arg2[%c0, %c0_0, %c0_1] : memref<1x4x256xf32, #tpu.memory_space<vmem>>, vector<1x4x256xf32>
    %1 = arith.mulf %0, %0 : vector<1x4x256xf32>
    %cst = arith.constant dense<0.000000e+00> : vector<1x256xf32>
    %2 = vector.multi_reduction <add>, %1, %cst [1] : vector<1x4x256xf32> to vector<1x256xf32>
    %3 = vector.shape_cast %2 : vector<1x256xf32> to vector<1x1x256xf32>
    %cst_2 = arith.constant 2.500000e-01 : f32
    %4 = vector.broadcast %cst_2 : f32 to vector<1x1x256xf32>
    %5 = arith.mulf %3, %4 : vector<1x1x256xf32>
    %cst_3 = arith.constant 9.99999993E-9 : f32
    %6 = vector.broadcast %cst_3 : f32 to vector<1x1x256xf32>
    %7 = arith.addf %5, %6 : vector<1x1x256xf32>
    %8 = math.rsqrt %7 : vector<1x1x256xf32>
    %9 = vector.broadcast %8 : vector<1x1x256xf32> to vector<1x4x256xf32>
    %10 = arith.mulf %0, %9 : vector<1x4x256xf32>
    %c0_4 = arith.constant 0 : index
    %c0_5 = arith.constant 0 : index
    %c0_6 = arith.constant 0 : index
    %11 = vector.load %arg3[%c0_4, %c0_5, %c0_6] : memref<1x4x256xf32, #tpu.memory_space<vmem>>, vector<1x4x256xf32>
    tpu.vector_store %arg3[%c0_4, %c0_5, %c0_6], %10 {strides = array<i32>} : memref<1x4x256xf32, #tpu.memory_space<vmem>>, vector<1x4x256xf32>,
    return
  }
  func.func @transform_0(%arg0: i32, %arg1: i32) -> (i32, i32, i32) {
    %c0_i32 = arith.constant 0 : i32
    %c0_i32_0 = arith.constant 0 : i32
    return %arg0, %c0_i32, %arg1 : i32, i32, i32
  }
  func.func @transform_1(%arg0: i32, %arg1: i32) -> (i32, i32, i32) {
    %c0_i32 = arith.constant 0 : i32
    %c0_i32_0 = arith.constant 0 : i32
    return %arg0, %c0_i32, %arg1 : i32, i32, i32
  }
}

</mosaic_0001>

<bundles_post_ra>
// kernel: pixel_norm.1
= control target key start
LH: loop header
LB: loop body
LE: loop exit
PB: predicated region body
PF: predicated region fallthrough
CT: control target
= control target key end

     0   :  { %s372_s6 = smov 0   ;;  %s374_s7 = smov 0   ;;  %s415_s0 = inlined_call_operand.vmem [shape: f32[2,4,256], index: 0, kind: input, shape index: {}]   ;;  %s416_s1 = inlined_call_operand.vmem [shape: f32[2,4,256], index: 1, kind: output, shape index: {}]  }
   0x1   :  { %s376_s8 = smov 0  }
   0x2 LB: > { %s23_s9 = sadd.s32 1, %s356_s7  ;;  %p301_p0 = scmp.ge.s32.totalorder %s360_s8, 1  ;;  %s360_s8 = sphi %s376_s8, %s11_s8   ;;  %s356_s7 = sphi %s374_s7, %s418_s7   ;;  %s352_s6 = sphi %s372_s6, %s417_s6  }
   0x3   : > { %p25_p1 = scmp.ge.s32.totalorder %s23_s9, 2  ;;  %p108_p2 = scmp.lt.s32.totalorder %s360_s8, 3 }
   0x5   : > { %s420_s9 = smov (%p25_p1, %s23_s9), 0  ;;  %p109_p3 = pnand %p301_p0, %p108_p2 }
   0x6   : > { %p137_p4 = scmp.lt.s32.totalorder (!%p109_p3), %s352_s6, 1 }
   0x7   : > { %112 = sbr.rel (%p109_p3) target bundleno = 68 (0x44), region = 24 }
   0xc   : > { %s422_s6 = smov (!%p137_p4, %s352_s6), 1  ;;  %vm164_vm0 = vcmask 1043456  }
   0xd   : > { %s308_s10 = sshll.u32 %s422_s6, 3 }
   0xe   : > { %s144_s13 = scalar_lea.vmem %s415_s0, %s308_s10  ;;  %s154_s16 = scalar_lea.vmem %s416_s1, %s308_s10 }
   0xf   : > { %v156_v0 = vld [vmem:[%s144_s13] sm:$0xff] }
  0x10   : > { %v157_v1 = vmul.f32 %v156_v0, %v156_v0 }
  0x12   : > { %159 = vst [vmem:[#allocation1] ss:$2 sm:$0xff] %v157_v1 }
  0x19   : > { %v160_v2 = vld.sshfl [vmem:[#allocation1] sm:$0xff pattern:$0x75316420]  ;;  %v161_v3 = vld.sshfl [vmem:[#allocation1 + $0x8] sm:$0xff pattern:$0x75316420] }
  0x1a   : > { %v165_v4 = vsel %vm164_vm0, %v160_v2, 0.0  ;;  %v172_v5 = vsel %vm164_vm0, %v161_v3, 0.0 }
  0x1b   : > { %v166_v6 = vrot.slane %v165_v4, 4  ;;  %v173_v7 = vrot.slane %v172_v5, 4 }
  0x1d   : > { %v167_v8 = vadd.f32 %v166_v6, %v165_v4  ;;  %v174_v9 = vadd.f32 %v173_v7, %v172_v5 }
  0x1f   : > { %v168_v10 = vrot.slane %v167_v8, 2  ;;  %v175_v11 = vrot.slane %v174_v9, 2 }
  0x21   : > { %v169_v12 = vadd.f32 %v168_v10, %v167_v8  ;;  %v176_v13 = vadd.f32 %v175_v11, %v174_v9 }
  0x23   : > { %v170_v14 = vrot.slane %v169_v12, 1  ;;  %v177_v15 = vrot.slane %v176_v13, 1 }
  0x25   : > { %v171_v16 = vadd.f32 %v170_v14, %v169_v12  ;;  %v178_v17 = vadd.f32 %v177_v15, %v176_v13 }
  0x27   : > { %v179_v18 = vmul.f32 0.25, %v171_v16  ;;  %v180_v19 = vmul.f32 0.25, %v178_v17 }
  0x29   : > { %v181_v20 = vadd.f32 1e-08, %v179_v18  ;;  %v182_v21 = vadd.f32 1e-08, %v180_v19 }
  0x2b   : > { %334 = vrsqrt.f32 %v181_v20  ;;  %vm199_vm3 = vweird.f32 %v182_v21  ;;  %vm189_vm5 = vweird.f32 %v181_v20 }
  0x2c   : > { %336 = vrsqrt.f32 %v182_v21 }
  0x31   : > { %v335_v22 = vpop.eup %334 }
  0x32   : > { %v337_v23 = vpop.eup %336  ;;  %v184_v24 = vmul.f32 %v335_v22, %v181_v20  ;;  %vm190_vm2 = vweird.f32 %v335_v22 }
  0x33   : > { %v194_v25 = vmul.f32 %v337_v23, %v182_v21  ;;  %vm200_vm1 = vweird.f32 %v337_v23  ;;  %vm191_vm6 = vmor %vm189_vm5, %vm190_vm2 }
  0x34   : > { %v185_v26 = vmul.f32 %v335_v22, %v184_v24  ;;  %vm201_vm4 = vmor %vm199_vm3, %vm200_vm1 }
  0x35   : > { %v195_v27 = vmul.f32 %v337_v23, %v194_v25 }
  0x36   : > { %v186_v28 = vmul.f32 0.5, %v185_v26 }
  0x37   : > { %v196_v29 = vmul.f32 0.5, %v195_v27 }
  0x38   : > { %v187_v30 = vsub.f32 1.5, %v186_v28 }
  0x39   : > { %v197_v31 = vsub.f32 1.5, %v196_v29 }
  0x3a   : > { %v188_v32 = vmul.f32 %v335_v22, %v187_v30 }
  0x3b   : > { %v198_v33 = vmul.f32 %v337_v23, %v197_v31 }
  0x3c   : > { %v192_v36 = vsel %vm191_vm6, %v335_v22, %v188_v32 }
  0x3d   : > { %v202_v34 = vsel %vm201_vm4, %v337_v23, %v198_v33 }
  0x3e   : > { %v205_v35 = vrot.slane %v202_v34, 4 }
  0x40   : > { %v206_v37 = vsel %vm164_vm0, %v192_v36, %v205_v35 }
  0x41   : > { %v208_v38 = vmul.f32 %v206_v37, %v156_v0 }
  0x43   : > { %209 = vst [vmem:[%s154_s16] sm:$0xff] %v208_v38 }
  0x44 PF: > { %s11_s8 = sadd.s32 1, %s360_s8   ;;  %s417_s6 = smov %s356_s7 }
  0x45   : > { %p8_p5 = scmp.ge.s32.totalorder %s11_s8, 4   ;;  %s418_s7 = smov %s420_s9 }
  0x47   :  { %10 = sbr.rel (!%p8_p5) target bundleno = 2 (0x2), region = 54 }

</bundles_post_ra>
